<compile_context>
chip_gen: v5e
topology: v5e:2x2
jax: 0.10.0
libtpu: 0.0.40
codegen_flags: <defaults>
</compile_context>

<pallas_src>
import functools

import jax
import jax.numpy as jnp
from jax import lax
from jax.experimental import pallas as pl
from jax.experimental.pallas import tpu as pltpu


# ----------------------------------------------------------------------------
# Fused kernel: one batch element per grid step.
#   x      : (1, T, C)
#   w_qkv  : (C, 3*H*Hs)   columns ordered [q heads | k heads | v heads]
#   w_proj : (E, E)        (= nn.Linear weight.T)
#   b_proj : (1, E)
#   out    : (1, T, E)     with E = H*Hs  (lane-dense store)
# ----------------------------------------------------------------------------
def _mha_fused_kernel(x_ref, wqkv_ref, wproj_ref, bproj_ref, o_ref,
                      *, num_heads, head_size):
    x = x_ref[0]                                   # (T, C)
    T, C = x.shape
    H, Hs = num_heads, head_size

    # Single fused QKV matmul for all heads: (T, C) @ (C, 3*H*Hs).
    qkv = jnp.dot(x, wqkv_ref[...], preferred_element_type=jnp.float32)

    # PyTorch reference scales by C**-0.5 (embedding dim, nonstandard). Folded
    # into q so the scale is O(T*Hs) instead of O(T*T).
    scale = float(C) ** (-0.5)

    # Causal (lower-triangular) mask, shared across heads.
    row = lax.broadcasted_iota(jnp.int32, (T, T), 0)
    col = lax.broadcasted_iota(jnp.int32, (T, T), 1)
    causal = col <= row
    neg_big = jnp.float32(-1e30)

    head_outs = []
    for h in range(H):                             # static unroll (H is small)
        q = qkv[:, h * Hs:(h + 1) * Hs] * scale                    # (T, Hs)
        k = qkv[:, (H + h) * Hs:(H + h + 1) * Hs]                  # (T, Hs)
        v = qkv[:, (2 * H + h) * Hs:(2 * H + h + 1) * Hs]          # (T, Hs)

        # q @ k^T without materializing a transpose: contract Hs vs Hs.
        wei = lax.dot_general(
            q, k,
            dimension_numbers=(((1,), (1,)), ((), ())),
            preferred_element_type=jnp.float32)                    # (T, T)
        wei = jnp.where(causal, wei, neg_big)

        # softmax along the last axis (f32 math; v5e has no bf16 VPU/EUP)
        m = jnp.max(wei, axis=-1, keepdims=True)
        p = jnp.exp(wei - m)
        denom = jnp.sum(p, axis=-1, keepdims=True)
        p = p * pl.reciprocal(denom, approx=True)

        head_outs.append(
            jnp.dot(p, v, preferred_element_type=jnp.float32))     # (T, Hs)

    cat = jnp.concatenate(head_outs, axis=-1)                      # (T, H*Hs)

    # Fused output projection + bias, written lane-dense as (T, E).
    y = jnp.dot(cat, wproj_ref[...], preferred_element_type=jnp.float32)
    y = y + bproj_ref[...]                                         # (1,E) bcast
    o_ref[0] = y.astype(o_ref.dtype)


# ----------------------------------------------------------------------------
# Full MultiHeadAttention forward
#   x        : (B, T, C)
#   wk/wq/wv : (H, C, Hs)   (per-head nn.Linear weight.T, stacked over heads)
#   w_proj   : (E, E)       (nn.Linear weight.T),  b_proj : (1, E)
# ----------------------------------------------------------------------------
@jax.jit
def multi_head_attention(x, wk, wq, wv, w_proj, b_proj):
    B, T, C = x.shape
    H, _, Hs = wk.shape
    E = H * Hs

    # Stack all per-head QKV weights into one lane-dense RHS: (C, 3*H*Hs),
    # column order [q_h0..q_hH-1 | k_h0.. | v_h0..] to match in-kernel slicing.
    def _stack(w):  # (H, C, Hs) -> (C, H*Hs)
        return jnp.transpose(w, (1, 0, 2)).reshape(C, H * Hs)

    w_qkv = jnp.concatenate([_stack(wq), _stack(wk), _stack(wv)], axis=-1)

    kernel = functools.partial(_mha_fused_kernel, num_heads=H, head_size=Hs)

    return pl.pallas_call(
        kernel,
        out_shape=jax.ShapeDtypeStruct((B, T, E), x.dtype),
        grid_spec=pltpu.PrefetchScalarGridSpec(
            num_scalar_prefetch=0,
            grid=(B,),
            in_specs=[
                pl.BlockSpec((1, T, C), lambda b: (b, 0, 0)),
                pl.BlockSpec((C, 3 * H * Hs), lambda b: (0, 0)),   # VMEM-resident
                pl.BlockSpec((E, E), lambda b: (0, 0)),            # VMEM-resident
                pl.BlockSpec((1, E), lambda b: (0, 0)),
            ],
            out_specs=pl.BlockSpec((1, T, E), lambda b: (b, 0, 0)),
        ),
        compiler_params=pltpu.CompilerParams(
            dimension_semantics=("parallel",),
        ),
    )(x, w_qkv, w_proj, b_proj)


# ----------------------------------------------------------------------------
# Pure-JAX reference (mirrors the PyTorch forward) for a sanity check
# ----------------------------------------------------------------------------
def reference(x, wk, wq, wv, w_proj, b_proj):
    B, T, C = x.shape
    outs = []
    for h in range(wk.shape[0]):
        k = x @ wk[h]
        q = x @ wq[h]
        v = x @ wv[h]
        wei = (q @ jnp.swapaxes(k, -2, -1)) * (C ** -0.5)
        mask = jnp.tril(jnp.ones((T, T), bool))
        wei = jnp.where(mask, wei, -jnp.inf)
        wei = jax.nn.softmax(wei, axis=-1)
        outs.append(wei @ v)
    cat = jnp.concatenate(outs, axis=-1)
    return cat @ w_proj + b_proj[0]


if __name__ == "__main__":
    # module hyper-params (num_heads * head_size == num_embed, required by proj)
    num_heads = 4
    head_size = 8
    num_embed = 32
    block_size = 8          # == T
    B, T = 2, block_size

    key = jax.random.PRNGKey(0)
    kx, kk, kq, kv, kw, kb = jax.random.split(key, 6)

    x = jax.random.normal(kx, (B, T, num_embed), dtype=jnp.float32)

    # per-head weights, stacked: (H, C, head_size)  (== nn.Linear weight.T)
    wk = 0.1 * jax.random.normal(kk, (num_heads, num_embed, head_size), jnp.float32)
    wq = 0.1 * jax.random.normal(kq, (num_heads, num_embed, head_size), jnp.float32)
    wv = 0.1 * jax.random.normal(kv, (num_heads, num_embed, head_size), jnp.float32)

    # projection: nn.Linear(num_embed, num_embed) -> weight.T (E, E) + bias
    w_proj = 0.1 * jax.random.normal(kw, (num_embed, num_embed), jnp.float32)
    b_proj = 0.1 * jax.random.normal(kb, (1, num_embed), jnp.float32)

    y = multi_head_attention(x, wk, wq, wv, w_proj, b_proj)
    y = jax.block_until_ready(y)

    y_ref = reference(x, wk, wq, wv, w_proj, b_proj)
    assert y.shape == (B, T, num_embed)
    # tolerance loosened slightly vs pure-f32: pl.reciprocal(approx=True) in the
    # softmax normalization has ~2^-12 relative error (expected, not a bug).
    assert jnp.allclose(y, y_ref, atol=5e-3, rtol=5e-3), "mismatch vs reference"

    print("KERNEL_OK")
</pallas_src>

<mosaic_0001>
module attributes {stable_mosaic.version = 11 : i64} {
  func.func @_mha_fused_kernel(%arg0: i32, %arg1: memref<1x8x32xf32, #tpu.memory_space<vmem>>, %arg2: memref<32x96xf32, #tpu.memory_space<vmem>>, %arg3: memref<32x32xf32, #tpu.memory_space<vmem>>, %arg4: memref<1x32xf32, #tpu.memory_space<vmem>>, %arg5: memref<1x8x32xf32, #tpu.memory_space<vmem>>) attributes {dimension_semantics = [#tpu.dimension_semantics<parallel>], iteration_bounds = array<i64: 2>, scalar_prefetch = 0 : i64, scratch_operands = 0 : i64, tpu.core_type = #tpu.core_type<tc>, window_params = [{transform_indices = @transform_0, window_bounds = array<i64: 1, 8, 32>}, {pipeline_mode = #tpu.pipeline_mode<synchronous>, transform_indices = @transform_1, window_bounds = array<i64: 32, 96>}, {pipeline_mode = #tpu.pipeline_mode<synchronous>, transform_indices = @transform_2, window_bounds = array<i64: 32, 32>}, {pipeline_mode = #tpu.pipeline_mode<synchronous>, transform_indices = @transform_3, window_bounds = array<i64: 1, 32>}, {transform_indices = @transform_4, window_bounds = array<i64: 1, 8, 32>}]} {
    %c0 = arith.constant 0 : index
    %c0_0 = arith.constant 0 : index
    %c0_1 = arith.constant 0 : index
    %0 = vector.load %arg1[%c0, %c0_0, %c0_1] : memref<1x8x32xf32, #tpu.memory_space<vmem>>, vector<1x8x32xf32>
    %1 = vector.shape_cast %0 : vector<1x8x32xf32> to vector<8x32xf32>
    %c0_2 = arith.constant 0 : index
    %c0_3 = arith.constant 0 : index
    %2 = vector.load %arg2[%c0_2, %c0_3] : memref<32x96xf32, #tpu.memory_space<vmem>>, vector<32x96xf32>
    %cst = arith.constant dense<0.000000e+00> : vector<8x96xf32>
    %3 = tpu.matmul %1, %2, %cst {dimension_numbers = #tpu.dot_dimension_numbers<[1], [0], [0], [1], [0, 0, 1, 1], [], []>} : vector<8x32xf32>, vector<32x96xf32>, vector<8x96xf32> -> vector<8x96xf32>
    %4 = tpu.iota {dimensions = array<i32: 0>} : vector<8x8xi32>
    %5 = tpu.iota {dimensions = array<i32: 1>} : vector<8x8xi32>
    %6 = arith.cmpi sle, %5, %4 : vector<8x8xi32>
    %7 = vector.extract_strided_slice %3 {offsets = [0, 0], sizes = [8, 8], strides = [1, 1]} : vector<8x96xf32> to vector<8x8xf32>
    %cst_4 = arith.constant 0.176776692 : f32
    %8 = vector.broadcast %cst_4 : f32 to vector<8x8xf32>
    %9 = arith.mulf %7, %8 : vector<8x8xf32>
    %10 = vector.extract_strided_slice %3 {offsets = [0, 32], sizes = [8, 8], strides = [1, 1]} : vector<8x96xf32> to vector<8x8xf32>
    %11 = vector.extract_strided_slice %3 {offsets = [0, 64], sizes = [8, 8], strides = [1, 1]} : vector<8x96xf32> to vector<8x8xf32>
    %cst_5 = arith.constant dense<0.000000e+00> : vector<8x8xf32>
    %12 = tpu.matmul %9, %10, %cst_5 {dimension_numbers = #tpu.dot_dimension_numbers<[1], [1], [0], [0], [0, 0, 1, 0], [], []>} : vector<8x8xf32>, vector<8x8xf32>, vector<8x8xf32> -> vector<8x8xf32>
    %cst_6 = arith.constant -1.000000e+30 : f32
    %13 = vector.broadcast %cst_6 : f32 to vector<8x8xf32>
    %14 = arith.select %6, %12, %13 : vector<8x8xi1>, vector<8x8xf32>
    %cst_7 = arith.constant dense<0xFF800000> : vector<8xf32>
    %15 = vector.multi_reduction <maximumf>, %14, %cst_7 [1] : vector<8x8xf32> to vector<8xf32>
    %16 = vector.shape_cast %15 : vector<8xf32> to vector<8x1xf32>
    %17 = vector.broadcast %16 : vector<8x1xf32> to vector<8x8xf32>
    %18 = arith.subf %14, %17 : vector<8x8xf32>
    %19 = math.exp %18 : vector<8x8xf32>
    %cst_8 = arith.constant dense<0.000000e+00> : vector<8xf32>
    %20 = vector.multi_reduction <add>, %19, %cst_8 [1] : vector<8x8xf32> to vector<8xf32>
    %21 = vector.shape_cast %20 : vector<8xf32> to vector<8x1xf32>
    %22 = tpu.reciprocal %21 {approx = true} : vector<8x1xf32> -> vector<8x1xf32>
    %23 = vector.broadcast %22 : vector<8x1xf32> to vector<8x8xf32>
    %24 = arith.mulf %19, %23 : vector<8x8xf32>
    %cst_9 = arith.constant dense<0.000000e+00> : vector<8x8xf32>
    %25 = tpu.matmul %24, %11, %cst_9 {dimension_numbers = #tpu.dot_dimension_numbers<[1], [0], [0], [1], [0, 0, 1, 1], [], []>} : vector<8x8xf32>, vector<8x8xf32>, vector<8x8xf32> -> vector<8x8xf32>
    %26 = vector.extract_strided_slice %3 {offsets = [0, 8], sizes = [8, 8], strides = [1, 1]} : vector<8x96xf32> to vector<8x8xf32>
    %cst_10 = arith.constant 0.176776692 : f32
    %27 = vector.broadcast %cst_10 : f32 to vector<8x8xf32>
    %28 = arith.mulf %26, %27 : vector<8x8xf32>
    %29 = vector.extract_strided_slice %3 {offsets = [0, 40], sizes = [8, 8], strides = [1, 1]} : vector<8x96xf32> to vector<8x8xf32>
    %30 = vector.extract_strided_slice %3 {offsets = [0, 72], sizes = [8, 8], strides = [1, 1]} : vector<8x96xf32> to vector<8x8xf32>
    %cst_11 = arith.constant dense<0.000000e+00> : vector<8x8xf32>
    %31 = tpu.matmul %28, %29, %cst_11 {dimension_numbers = #tpu.dot_dimension_numbers<[1], [1], [0], [0], [0, 0, 1, 0], [], []>} : vector<8x8xf32>, vector<8x8xf32>, vector<8x8xf32> -> vector<8x8xf32>
    %cst_12 = arith.constant -1.000000e+30 : f32
    %32 = vector.broadcast %cst_12 : f32 to vector<8x8xf32>
    %33 = arith.select %6, %31, %32 : vector<8x8xi1>, vector<8x8xf32>
    %cst_13 = arith.constant dense<0xFF800000> : vector<8xf32>
    %34 = vector.multi_reduction <maximumf>, %33, %cst_13 [1] : vector<8x8xf32> to vector<8xf32>
    %35 = vector.shape_cast %34 : vector<8xf32> to vector<8x1xf32>
    %36 = vector.broadcast %35 : vector<8x1xf32> to vector<8x8xf32>
    %37 = arith.subf %33, %36 : vector<8x8xf32>
    %38 = math.exp %37 : vector<8x8xf32>
    %cst_14 = arith.constant dense<0.000000e+00> : vector<8xf32>
    %39 = vector.multi_reduction <add>, %38, %cst_14 [1] : vector<8x8xf32> to vector<8xf32>
    %40 = vector.shape_cast %39 : vector<8xf32> to vector<8x1xf32>
    %41 = tpu.reciprocal %40 {approx = true} : vector<8x1xf32> -> vector<8x1xf32>
    %42 = vector.broadcast %41 : vector<8x1xf32> to vector<8x8xf32>
    %43 = arith.mulf %38, %42 : vector<8x8xf32>
    %cst_15 = arith.constant dense<0.000000e+00> : vector<8x8xf32>
    %44 = tpu.matmul %43, %30, %cst_15 {dimension_numbers = #tpu.dot_dimension_numbers<[1], [0], [0], [1], [0, 0, 1, 1], [], []>} : vector<8x8xf32>, vector<8x8xf32>, vector<8x8xf32> -> vector<8x8xf32>
    %45 = vector.extract_strided_slice %3 {offsets = [0, 16], sizes = [8, 8], strides = [1, 1]} : vector<8x96xf32> to vector<8x8xf32>
    %cst_16 = arith.constant 0.176776692 : f32
    %46 = vector.broadcast %cst_16 : f32 to vector<8x8xf32>
    %47 = arith.mulf %45, %46 : vector<8x8xf32>
    %48 = vector.extract_strided_slice %3 {offsets = [0, 48], sizes = [8, 8], strides = [1, 1]} : vector<8x96xf32> to vector<8x8xf32>
    %49 = vector.extract_strided_slice %3 {offsets = [0, 80], sizes = [8, 8], strides = [1, 1]} : vector<8x96xf32> to vector<8x8xf32>
    %cst_17 = arith.constant dense<0.000000e+00> : vector<8x8xf32>
    %50 = tpu.matmul %47, %48, %cst_17 {dimension_numbers = #tpu.dot_dimension_numbers<[1], [1], [0], [0], [0, 0, 1, 0], [], []>} : vector<8x8xf32>, vector<8x8xf32>, vector<8x8xf32> -> vector<8x8xf32>
    %cst_18 = arith.constant -1.000000e+30 : f32
    %51 = vector.broadcast %cst_18 : f32 to vector<8x8xf32>
    %52 = arith.select %6, %50, %51 : vector<8x8xi1>, vector<8x8xf32>
    %cst_19 = arith.constant dense<0xFF800000> : vector<8xf32>
    %53 = vector.multi_reduction <maximumf>, %52, %cst_19 [1] : vector<8x8xf32> to vector<8xf32>
    %54 = vector.shape_cast %53 : vector<8xf32> to vector<8x1xf32>
    %55 = vector.broadcast %54 : vector<8x1xf32> to vector<8x8xf32>
    %56 = arith.subf %52, %55 : vector<8x8xf32>
    %57 = math.exp %56 : vector<8x8xf32>
    %cst_20 = arith.constant dense<0.000000e+00> : vector<8xf32>
    %58 = vector.multi_reduction <add>, %57, %cst_20 [1] : vector<8x8xf32> to vector<8xf32>
    %59 = vector.shape_cast %58 : vector<8xf32> to vector<8x1xf32>
    %60 = tpu.reciprocal %59 {approx = true} : vector<8x1xf32> -> vector<8x1xf32>
    %61 = vector.broadcast %60 : vector<8x1xf32> to vector<8x8xf32>
    %62 = arith.mulf %57, %61 : vector<8x8xf32>
    %cst_21 = arith.constant dense<0.000000e+00> : vector<8x8xf32>
    %63 = tpu.matmul %62, %49, %cst_21 {dimension_numbers = #tpu.dot_dimension_numbers<[1], [0], [0], [1], [0, 0, 1, 1], [], []>} : vector<8x8xf32>, vector<8x8xf32>, vector<8x8xf32> -> vector<8x8xf32>
    %64 = vector.extract_strided_slice %3 {offsets = [0, 24], sizes = [8, 8], strides = [1, 1]} : vector<8x96xf32> to vector<8x8xf32>
    %cst_22 = arith.constant 0.176776692 : f32
    %65 = vector.broadcast %cst_22 : f32 to vector<8x8xf32>
    %66 = arith.mulf %64, %65 : vector<8x8xf32>
    %67 = vector.extract_strided_slice %3 {offsets = [0, 56], sizes = [8, 8], strides = [1, 1]} : vector<8x96xf32> to vector<8x8xf32>
    %68 = vector.extract_strided_slice %3 {offsets = [0, 88], sizes = [8, 8], strides = [1, 1]} : vector<8x96xf32> to vector<8x8xf32>
    %cst_23 = arith.constant dense<0.000000e+00> : vector<8x8xf32>
    %69 = tpu.matmul %66, %67, %cst_23 {dimension_numbers = #tpu.dot_dimension_numbers<[1], [1], [0], [0], [0, 0, 1, 0], [], []>} : vector<8x8xf32>, vector<8x8xf32>, vector<8x8xf32> -> vector<8x8xf32>
    %cst_24 = arith.constant -1.000000e+30 : f32
    %70 = vector.broadcast %cst_24 : f32 to vector<8x8xf32>
    %71 = arith.select %6, %69, %70 : vector<8x8xi1>, vector<8x8xf32>
    %cst_25 = arith.constant dense<0xFF800000> : vector<8xf32>
    %72 = vector.multi_reduction <maximumf>, %71, %cst_25 [1] : vector<8x8xf32> to vector<8xf32>
    %73 = vector.shape_cast %72 : vector<8xf32> to vector<8x1xf32>
    %74 = vector.broadcast %73 : vector<8x1xf32> to vector<8x8xf32>
    %75 = arith.subf %71, %74 : vector<8x8xf32>
    %76 = math.exp %75 : vector<8x8xf32>
    %cst_26 = arith.constant dense<0.000000e+00> : vector<8xf32>
    %77 = vector.multi_reduction <add>, %76, %cst_26 [1] : vector<8x8xf32> to vector<8xf32>
    %78 = vector.shape_cast %77 : vector<8xf32> to vector<8x1xf32>
    %79 = tpu.reciprocal %78 {approx = true} : vector<8x1xf32> -> vector<8x1xf32>
    %80 = vector.broadcast %79 : vector<8x1xf32> to vector<8x8xf32>
    %81 = arith.mulf %76, %80 : vector<8x8xf32>
    %cst_27 = arith.constant dense<0.000000e+00> : vector<8x8xf32>
    %82 = tpu.matmul %81, %68, %cst_27 {dimension_numbers = #tpu.dot_dimension_numbers<[1], [0], [0], [1], [0, 0, 1, 1], [], []>} : vector<8x8xf32>, vector<8x8xf32>, vector<8x8xf32> -> vector<8x8xf32>
    %83 = tpu.concatenate %25, %44, %63, %82 in 1 : vector<8x8xf32>, vector<8x8xf32>, vector<8x8xf32>, vector<8x8xf32> -> vector<8x32xf32>
    %c0_28 = arith.constant 0 : index
    %c0_29 = arith.constant 0 : index
    %84 = vector.load %arg3[%c0_28, %c0_29] : memref<32x32xf32, #tpu.memory_space<vmem>>, vector<32x32xf32>
    %cst_30 = arith.constant dense<0.000000e+00> : vector<8x32xf32>
    %85 = tpu.matmul %83, %84, %cst_30 {dimension_numbers = #tpu.dot_dimension_numbers<[1], [0], [0], [1], [0, 0, 1, 1], [], []>} : vector<8x32xf32>, vector<32x32xf32>, vector<8x32xf32> -> vector<8x32xf32>
    %c0_31 = arith.constant 0 : index
    %c0_32 = arith.constant 0 : index
    %86 = vector.load %arg4[%c0_31, %c0_32] : memref<1x32xf32, #tpu.memory_space<vmem>>, vector<1x32xf32>
    %87 = vector.broadcast %86 : vector<1x32xf32> to vector<8x32xf32>
    %88 = arith.addf %85, %87 : vector<8x32xf32>
    %c0_33 = arith.constant 0 : index
    %c0_34 = arith.constant 0 : index
    %c0_35 = arith.constant 0 : index
    %89 = vector.load %arg5[%c0_33, %c0_34, %c0_35] : memref<1x8x32xf32, #tpu.memory_space<vmem>>, vector<1x8x32xf32>
    %90 = vector.shape_cast %89 : vector<1x8x32xf32> to vector<8x32xf32>
    %91 = vector.shape_cast %88 : vector<8x32xf32> to vector<1x8x32xf32>
    tpu.vector_store %arg5[%c0_33, %c0_34, %c0_35], %91 {strides = array<i32>} : memref<1x8x32xf32, #tpu.memory_space<vmem>>, vector<1x8x32xf32>,
    return
  }
  func.func @transform_0(%arg0: i32) -> (i32, i32, i32) {
    %c0_i32 = arith.constant 0 : i32
    %c0_i32_0 = arith.constant 0 : i32
    %c0_i32_1 = arith.constant 0 : i32
    return %arg0, %c0_i32, %c0_i32_0 : i32, i32, i32
  }
  func.func @transform_1(%arg0: i32) -> (i32, i32) {
    %c0_i32 = arith.constant 0 : i32
    %c0_i32_0 = arith.constant 0 : i32
    %c0_i32_1 = arith.constant 0 : i32
    return %c0_i32, %c0_i32_0 : i32, i32
  }
  func.func @transform_2(%arg0: i32) -> (i32, i32) {
    %c0_i32 = arith.constant 0 : i32
    %c0_i32_0 = arith.constant 0 : i32
    %c0_i32_1 = arith.constant 0 : i32
    return %c0_i32, %c0_i32_0 : i32, i32
  }
  func.func @transform_3(%arg0: i32) -> (i32, i32) {
    %c0_i32 = arith.constant 0 : i32
    %c0_i32_0 = arith.constant 0 : i32
    %c0_i32_1 = arith.constant 0 : i32
    return %c0_i32, %c0_i32_0 : i32, i32
  }
  func.func @transform_4(%arg0: i32) -> (i32, i32, i32) {
    %c0_i32 = arith.constant 0 : i32
    %c0_i32_0 = arith.constant 0 : i32
    %c0_i32_1 = arith.constant 0 : i32
    return %arg0, %c0_i32, %c0_i32_0 : i32, i32, i32
  }
}

</mosaic_0001>

<bundles_post_ra>
// kernel: multi_head_attention.1
= control target key start
LH: loop header
LB: loop body
LE: loop exit
PB: predicated region body
PF: predicated region fallthrough
CT: control target
= control target key end

     0   :  { %9 = vsyncpa [#allocation3], 0  ;;  %s961_s0 = inlined_call_operand.vmem [shape: f32[2,8,32], index: 0, kind: input, shape index: {}]   ;;  %s962_s1 = inlined_call_operand.vmem [shape: f32[32,96], index: 1, kind: input, shape index: {}]   ;;  %s963_s2 = inlined_call_operand.vmem [shape: f32[32,32], index: 2, kind: input, shape index: {}]   ;;  %s964_s3 = inlined_call_operand.vmem [shape: f32[1,32], index: 3, kind: input, shape index: {}]   ;;  %s965_s4 = inlined_call_operand.hbm [shape: f32[2,8,32], index: 4, kind: output, shape index: {}]  }
   0x1   :  { %11 = vsyncpa [#allocation3 + $0x1], 0  ;;  %s814_s15 = smov 0   ;;  %s816_s16 = smov 0  }
   0x2   :  { %s818_s17 = smov 0   ;;  %s820_s18 = smov 0  }
   0x3 LB: > { %s835_s19 = sadd.s32 4294967295, %s773_s18   ;;  %s617_s20 = sadd.s32 4294967294, %s773_s18   ;;  %s773_s18 = sphi %s820_s18, %s971_s18   ;;  %s769_s17 = sphi %s818_s17, %s970_s17   ;;  %s765_s16 = sphi %s816_s16, %s969_s16   ;;  %s761_s15 = sphi %s814_s15, %s968_s15  }
   0x4   : > { %s839_s21 = sadd.s32 1, %s773_s18   ;;  %s113_s22 = sadd.s32 1, %s769_s17 }
   0x5   : > { %s110_s23 = ssub.s32 %s773_s18, %s839_s21  ;;  %p123_p0 = scmp.ne.s32.totalorder %s769_s17, %s765_s16 }
   0x6   : > { %p111_p1 = scmp.eq.s32.totalorder %s110_s23, 0  ;;  %p124_p2 = scmp.eq.s32.totalorder %s835_s19, 1 }
   0x7   : > { %p129_p3 = scmp.ne.s32.totalorder %s765_s16, %s761_s15  ;;  %p130_p4 = scmp.eq.s32.totalorder %s617_s20, 1 }
   0x8   : > { %s850_s24 = scalar_select %p111_p1, %s769_s17, %s113_s22  }
   0x9   : > { %p852_p5 = por %p124_p2, %p123_p0  ;;  %p856_p6 = por %p130_p4, %p129_p3 }
   0xa   : > { %p620_p7 = scmp.ge.s32.totalorder %s773_s18, 1  ;;  %p164_p8 = scmp.lt.s32.totalorder %s773_s18, 3 }
   0xc   : > { %p165_p9 = pnand %p620_p7, %p164_p8 }
   0xd   : > { %p189_p10 = scmp.lt.s32.totalorder (!%p165_p9), %s835_s19, 1  ;;  %s775_s14 = smov (!%p165_p9), 72  }
   0xe   : > { %168 = sbr.rel (%p165_p9) target bundleno = 1069 (0x42d), region = 36  ;;  %s776_s20 = smov (!%p165_p9), 96  }
   0xf   : > { %s777_s22 = smov (!%p165_p9), 120   ;;  %s778_s23 = smov (!%p165_p9), 88  }
  0x10   : > { %s779_s27 = smov (!%p165_p9), 112   ;;  %s780_s28 = smov (!%p165_p9), 80  }
  0x11   : > { %s781_s29 = smov (!%p165_p9), 104   ;;  %s782_s30 = smov (!%p165_p9), 64  }
  0x12   : > { %s783_s5 = smov (!%p165_p9), 40   ;;  %s784_s6 = smov (!%p165_p9), 56  }
  0x13   : > { %v197_v0 = vld [vmem:[%s962_s1 + $0x18] sm:$0xff]  ;;  %v196_v1 = vld [vmem:[%s962_s1 + $0x10] sm:$0xff]  ;;  %v195_v2 = vld [vmem:[%s962_s1 + $0x8] sm:$0xff]  ;;  %s190_s7 = scalar_select %p189_p10, %s835_s19, 1  ;;  %vm198_vm0 = vcmask 261120   ;;  %vm231_vm1 = vcmask 64512   ;;  %v222_v14 = vlaneseq }
  0x14   : > { %214 = vmatpush.msra.mxu0 %v197_v0  ;;  %v194_v3 = vld [vmem:[%s962_s1] sm:$0xff]  ;;  %s786_s8 = smov 16   ;;  %s787_s9 = smov 8   ;;  %vm506_vm3 = vcmask 130048   ;;  %vm508_vm4 = vcmask 195584  }
  0x15   : > { %s622_s10 = sshll.u32 %s190_s7, 3  ;;  %v223_v15 = vshrl.u32 %v222_v14, 7  ;;  %v225_v16 = vand.u32 127, %v222_v14  ;;  %s785_s7 = smov 48  }
  0x16   : > { %215 = vmatpush.msra.mxu0 %v196_v1  ;;  %s192_s13 = scalar_lea.vmem %s961_s0, %s622_s10  ;;  %s788_s10 = smov 24  }
  0x17   : > { %v193_v4 = vld [vmem:[%s192_s13] sm:$0xff]  ;;  %vm226_vm2 = vcmp.le.s32.totalorder %v225_v16, %v223_v15 }
  0x18   : > { %216 = vmatpush.msra.mxu0 %v195_v2  ;;  %v694_v15 = vld [vmem:[%s964_s3] ss:$0 sm:$0xff] }
  0x1a   : > { %217 = vmatpush.msra.mxu0 %v194_v3 }
  0x1b   : > { %623 = vmatmul.msk.f32.vlgmr.msra.gmra.mxu0 %vm198_vm0, %v193_v4 }
  0x98   : > { %v880_v5 = vpop.f32.mrf.mxu0 }
  0x99   : > { %429 = vrot.lane.b32.xlu2 %v880_v5, %s775_s14  ;;  %229 = vrot.lane.b32.xlu0 %v880_v5, %s776_s20  ;;  %v227_v6 = vmul.f32 0.17677669, %v880_v5 }
  0x9b   : > { %295 = vrot.lane.b32.xlu1 %v227_v6, %s777_s22 }
  0xa1   : > { %297 = vrot.lane.b32.xlu0 %v880_v5, %s778_s23  ;;  %361 = vrot.lane.b32.xlu2 %v227_v6, %s779_s27  ;;  %s731_s23 = scalar_lea.hbm %s965_s4, 16 }
  0xa3   : > { %363 = vrot.lane.b32.xlu1 %v880_v5, %s780_s28  ;;  %s186_s28 = sand.u32 1, %s765_s16  }
  0xa4   : > { %s543_s13 = scalar_lea.sflag [#allocation3], %s186_s28 }
  0xa9   : > { %427 = vrot.lane.b32.xlu0 %v227_v6, %s781_s29  ;;  %s621_s29 = sshll.u32 %s186_s28, 3 }
  0xf3   : > { %v430_v7 = vpop.permute.xlu2 %429 }
  0xf4   : > { %633 = vmatpush.xpose.msk.msrb.mxu0 %vm231_vm1, %v430_v7  ;;  %v511_v7 = vld [vmem:[%s963_s2 + $0x8] sm:$0xff] }
  0xfb   : > { %v362_v12 = vpop.permute.xlu2 %361 }
 0x10b   : > { %v230_v8 = vpop.permute.xlu0 %229 }
 0x10c   : > { %624 = vmatpush.xpose.msk.msra.mxu1 %vm231_vm1, %v230_v8  ;;  %v510_v8 = vld [vmem:[%s963_s2] sm:$0xff] }
 0x10d   : > { %v296_v9 = vpop.permute.xlu1 %295 }
 0x10f   : > { %625 = vmatmul.msk.f32.vlgmr.msra.gmra.mxu1 %vm231_vm1, %v227_v6  ;;  %v512_v6 = vld [vmem:[%s963_s2 + $0x10] sm:$0xff] }
 0x113   : > { %v298_v10 = vpop.permute.xlu0 %297 }
 0x114   : > { %627 = vmatpush.xpose.msk.msra.mxu3 %vm231_vm1, %v298_v10 }
 0x115   : > { %v364_v11 = vpop.permute.xlu1 %363 }
 0x116   : > { %630 = vmatpush.xpose.msk.msrb.mxu1 %vm231_vm1, %v364_v11 }
 0x117   : > { %628 = vmatmul.msk.f32.vlgmr.msra.gmra.mxu3 %vm231_vm1, %v296_v9 }
 0x119   : > { %631 = vmatmul.msk.f32.vlgmr.msrb.gmra.mxu1 %vm231_vm1, %v362_v12 }
 0x11b   : > { %v428_v13 = vpop.permute.xlu0 %427 }
 0x11c   : > { %634 = vmatmul.msk.f32.vlgmr.msrb.gmra.mxu0 %vm231_vm1, %v428_v13 }
 0x18c   : > { %v254_v17 = vpop.f32.mrf.mxu1 }
 0x18d   : > { %v257_v18 = vsel %vm226_vm2, %v254_v17, -1e+30 }
 0x18e   : > { %v258_v19 = vsel %vm231_vm1, %v257_v18, -inf }
 0x18f   : > { %259 = vmax.xlane.f32.xlu1 %v258_v19 }
 0x196   : > { %v386_v20 = vpop.f32.mrf.mxu1 }
 0x197   : > { %v389_v21 = vsel %vm226_vm2, %v386_v20, -1e+30 }
 0x198   : > { %v390_v22 = vsel %vm231_vm1, %v389_v21, -inf }
 0x199   : > { %391 = vmax.xlane.f32.xlu0 %v390_v22  ;;  %v452_v26 = vpop.f32.mrf.mxu0 }
 0x19a   : > { %v320_v23 = vpop.f32.mrf.mxu3  ;;  %v455_v27 = vsel %vm226_vm2, %v452_v26, -1e+30 }
 0x19b   : > { %v323_v24 = vsel %vm226_vm2, %v320_v23, -1e+30  ;;  %v456_v28 = vsel %vm231_vm1, %v455_v27, -inf }
 0x19c   : > { %v324_v25 = vsel %vm231_vm1, %v323_v24, -inf }
 0x19d   : > { %325 = vmax.xlane.f32.xlu2 %v324_v25 }
 0x1a5   : > { %457 = vmax.xlane.f32.xlu2 %v456_v28 }
 0x1ad   : > { %269 = vrot.lane.b32.xlu0 %v880_v5, %s782_s30  ;;  %s638_s30 = sshll.u32 %s835_s19, 3 }
 0x1b5   : > { %467 = vrot.lane.b32.xlu0 %v880_v5, %s783_s5 }
 0x202   : > { %v260_v29 = vpop.xlane.xlu1 %259 }
 0x203   : > { %v261_v30 = vsub.f32 %v257_v18, %v260_v29 }
 0x205   : > { %v262_v31 = vmul.f32 1.442695, %v261_v30 }
 0x207   : > { %695 = vpow2.f32 %v262_v31 }
 0x20c   : > { %v392_v32 = vpop.xlane.xlu0 %391 }
 0x20d   : > { %v696_v33 = vpop.eup %695  ;;  %v393_v34 = vsub.f32 %v389_v21, %v392_v32 }
 0x20e   : > { %v264_v35 = vsel %vm231_vm1, %v696_v33, 0.0 }
 0x20f   : > { %v394_v36 = vmul.f32 1.442695, %v393_v34  ;;  %265 = vadd.xlane.f32.xlu1 %v264_v35 }
 0x210   : > { %v326_v37 = vpop.xlane.xlu2 %325 }
 0x211   : > { %697 = vpow2.f32 %v394_v36  ;;  %v327_v42 = vsub.f32 %v323_v24, %v326_v37 }
 0x213   : > { %v328_v44 = vmul.f32 1.442695, %v327_v42 }
 0x217   : > { %v698_v38 = vpop.eup %697 }
 0x218   : > { %v458_v39 = vpop.xlane.xlu2 %457  ;;  %v396_v40 = vsel %vm231_vm1, %v698_v38, 0.0 }
 0x219   : > { %v459_v41 = vsub.f32 %v455_v27, %v458_v39  ;;  %397 = vadd.xlane.f32.xlu1 %v396_v40 }
 0x21b   : > { %v460_v43 = vmul.f32 1.442695, %v459_v41 }
 0x21d   : > { %699 = vpow2.f32 %v460_v43 }
 0x21e   : > { %701 = vpow2.f32 %v328_v44 }
 0x21f   : > { %v270_v45 = vpop.permute.xlu0 %269 }
 0x220   : > { %290 = vmatpush.msra.mxu2 %v270_v45 }
 0x223   : > { %v700_v46 = vpop.eup %699 }
 0x224   : > { %v462_v47 = vsel %vm231_vm1, %v700_v46, 0.0  ;;  %v702_v48 = vpop.eup %701 }
 0x225   : > { %463 = vadd.xlane.f32.xlu2 %v462_v47  ;;  %v330_v49 = vsel %vm231_vm1, %v702_v48, 0.0 }
 0x227   : > { %v468_v58 = vpop.permute.xlu0 %467 }
 0x22d   : > { %331 = vadd.xlane.f32.xlu2 %v330_v49 }
 0x232   : > { %335 = vrot.lane.b32.xlu1 %v880_v5, %s784_s6 }
 0x245   : > { %401 = vrot.lane.b32.xlu2 %v880_v5, %s785_s7  ;;  %v513_v5 = vld [vmem:[%s963_s2 + $0x18] sm:$0xff]  ;;  %s553_s7 = scalar_lea.hbm %s965_s4, %s638_s30 }
 0x246   : > { %533 = vmatpush.msra.mxu1 %v513_v5  ;;  %s557_s12 = sshll.u32 %s553_s7, 4  ;;  %s558_s12 = int_to_ptr.hbm [resolvable:$true] %s557_s12 }
 0x247   : > { %s725_s19 = sshra.s32 %s558_s12, 4  ;;  %s726_s19 = int_to_ptr.hbm [resolvable:$true] %s725_s19 }
 0x248   : > { %534 = vmatpush.msra.mxu1 %v512_v6  ;;  %s727_s14 = scalar_lea.hbm %s726_s19, 8  ;;  %p732_p0 = scmp.lt.s32.totalorder %s726_s19, %s965_s4 }
 0x249   : > { %p728_p11 = scmp.ne.s32.totalorder %s726_s19, %s727_s14  ;;  %p733_p1 = scmp.lt.s32.totalorder %s731_s23, %s727_s14 }
 0x24a   : > { %535 = vmatpush.msra.mxu1 %v511_v7 }
 0x24b   : > { %p729_p12 = pnand %p728_p11, %p852_p5  ;;  %p734_p2 = por %p733_p1, %p732_p0 }
 0x24c   : > { %536 = vmatpush.msra.mxu1 %v510_v8 }
 0x24d   : > { %p730_p13 = pneg %p729_p12 }
 0x24f   : > { %p735_p3 = pnand %p734_p2, %p730_p13 }
 0x282   : > { %v266_v50 = vpop.xlane.xlu1 %265 }
 0x283   : > { %703 = vrcp.f32 %v266_v50 }
 0x289   : > { %v704_v51 = vpop.eup %703 }
 0x28a   : > { %v268_v52 = vmul.f32 %v704_v51, %v696_v33 }
 0x28c   : > { %626 = vmatmul.msk.f32.vlgmr.msra.gmra.mxu2 %vm231_vm1, %v268_v52  ;;  %v398_v54 = vpop.xlane.xlu1 %397 }
 0x28d   : > { %705 = vrcp.f32 %v398_v54 }
 0x293   : > { %v706_v57 = vpop.eup %705 }
 0x294   : > { %v400_v62 = vmul.f32 %v706_v57, %v698_v38 }
 0x298   : > { %v464_v53 = vpop.xlane.xlu2 %463 }
 0x2a0   : > { %v332_v55 = vpop.xlane.xlu2 %331 }
 0x2a1   : > { %707 = vrcp.f32 %v332_v55 }
 0x2a2   : > { %709 = vrcp.f32 %v464_v53 }
 0x2a4   : > { %v336_v56 = vpop.permute.xlu1 %335 }
 0x2a5   : > { %356 = vmatpush.msrb.mxu2 %v336_v56 }
 0x2a7   : > { %488 = vmatpush.msra.mxu2 %v468_v58  ;;  %v708_v59 = vpop.eup %707 }
 0x2a8   : > { %v402_v60 = vpop.permute.xlu2 %401  ;;  %v334_v61 = vmul.f32 %v708_v59, %v702_v48  ;;  %v710_v63 = vpop.eup %709 }
 0x2a9   : > { %422 = vmatpush.msrb.mxu3 %v402_v60  ;;  %v466_v0 = vmul.f32 %v710_v63, %v700_v46 }
 0x2aa   : > { %629 = vmatmul.msk.f32.vlgmr.msrb.gmra.mxu2 %vm231_vm1, %v334_v61  ;;  %632 = vmatmul.msk.f32.vlgmr.msrb.gmra.mxu3 %vm231_vm1, %v400_v62 }
 0x2b2   : > { %635 = vmatmul.msk.f32.vlgmr.msra.gmra.mxu2 %vm231_vm1, %v466_v0 }
 0x30f   : > { %v292_v1 = vpop.f32.mrf.mxu2 }
 0x32d   : > { %v358_v2 = vpop.f32.mrf.mxu2  ;;  %v424_v3 = vpop.f32.mrf.mxu3 }
 0x32e   : > { %498 = vrot.lane.b32.xlu1 %v424_v3, %s786_s8  ;;  %494 = vrot.lane.b32.xlu0 %v358_v2, %s787_s9 }
 0x335   : > { %v490_v4 = vpop.f32.mrf.mxu2 }
 0x336   : > { %502 = vrot.lane.b32.xlu0 %v490_v4, %s788_s10  ;;  %s188_s10 = scalar_lea.vmem [#allocation2], %s621_s29 }
 0x337   : > { %s555_s11 = sshll.u32 %s188_s10, 4  ;;  %s556_s11 = int_to_ptr.vmem [resolvable:$true] %s555_s11 }
 0x3a0   : > { %v495_v9 = vpop.permute.xlu0 %494  ;;  %v499_v11 = vpop.permute.xlu1 %498 }
 0x3a1   : > { %v505_v10 = vsel %vm231_vm1, %v292_v1, %v495_v9 }
 0x3a2   : > { %v507_v12 = vsel %vm506_vm3, %v505_v10, %v499_v11 }
 0x3a8   : > { %v503_v13 = vpop.permute.xlu0 %502 }
 0x3a9   : > { %v509_v14 = vsel %vm508_vm4, %v507_v12, %v503_v13 }
 0x3aa   : > { %636 = vmatmul.msk.f32.vlgmr.msra.gmra.mxu1 %vm198_vm0, %v509_v14 }
 0x427   : > { %v538_v16 = vpop.f32.mrf.mxu1 }
 0x428   : > { %v539_v17 = vadd.f32 %v694_v15, %v538_v16 }
 0x42a   : > { %541 = vst.msk [vmem:[%s188_s10] sm:$0xff] %vm198_vm0, %v539_v17 }
 0x42b   : > { %738 = shalt.err (!%p735_p3)
}
 0x42c   : > { %641 = dma.vmem_to_hbm [thread:$0]  (%p852_p5), %s556_s11, 128, %s558_s12, %s543_s13  }
 0x42d PF: > { %p647_p4 = scmp.ge.s32.totalorder %s773_s18, 2  ;;  %s569_s28 = sand.u32 1, %s761_s15  }
 0x42e   : > { %s570_s30 = scalar_lea.sflag [#allocation3], %s569_s28 }
 0x42f   : > { %p644_p7 = pnand %p647_p4, %p856_p6 }
 0x431   : > { %p645_p8 = pneg %p644_p7 }
 0x433   : > { %756 = dma.done.wait (%p645_p8), %s570_s30, 128  }
 0x434   : > { %758 = vsyncadd (%p645_p8), %s570_s30, 4294967168  ;;  %p14_p9 = scmp.ge.s32.totalorder %s839_s21, 4   ;;  %s968_s15 = smov %s765_s16 }
 0x435   : > { %s969_s16 = smov %s769_s17  ;;  %s970_s17 = smov %s850_s24 }
 0x436   : > { %s971_s18 = smov %s839_s21  ;;  %16 = sbr.rel (!%p14_p9) target bundleno = 3 (0x3), region = 71 }
 0x43b   :  { %576 = vsyncpa [#allocation3], 1 }
 0x43c   :  { %578 = vsyncpa [#allocation3 + $0x1], 1 }

</bundles_post_ra>
